<compile_context>
chip_gen: v7x
topology: tpu7x:2x2x1
jax: 0.10.0
libtpu: 0.0.40
codegen_flags: <defaults>
</compile_context>

<pallas_src>
import functools

import jax
import jax.numpy as jnp
from jax.experimental import pallas as pl
from jax.experimental.pallas import tpu as pltpu


def _round_up(x, m):
    return (x + m - 1) // m * m


def _conv_bn_relu_kernel(x_ref, w_ref, bias_ref, o_ref, *,
                         KH, KW, stride, Wp, L_mat, Ho, Wo,
                         use_bias, use_relu):
    """One grid step processes B images.

    x_ref:    (B, Cin, L_in)      zero-padded, lane-dense flattened input, bf16
    w_ref:    (KH*KW, Cout, Cin)  conv weight with BN scale folded in, bf16
    bias_ref: (Cout, 1)           folded BN shift (+ conv bias), f32
    o_ref:    (B, Cout, Ho*Wo)    output tile (lane-dense flattened spatial axis)
    """
    B = x_ref.shape[0]
    w_all = w_ref[...]                      # (KH*KW, Cout, Cin), tiny
    bias = bias_ref[...] if use_bias else None

    for b in range(B):
        x = x_ref[b]                        # (Cin, L_in) bf16, lane-dense

        # Tap-by-tap MXU accumulation.  Each tap is a cheap static lane-offset
        # slice of the flat slab (no sublane->lane relayout, no im2col slab).
        acc = None
        for kh in range(KH):
            for kw in range(KW):
                t = kh * KW + kw
                off = kh * Wp + kw
                xs = x[:, off:off + L_mat]  # (Cin, L_mat)
                part = jnp.dot(w_all[t], xs, preferred_element_type=jnp.float32)
                acc = part if acc is None else acc + part

        # Compact valid output columns once per image: output (ho, wo) lives at
        # flat index ho*stride*Wp + wo*stride of the padded grid.
        rows = []
        for ho in range(Ho):
            start = ho * stride * Wp
            if stride == 1:
                rows.append(acc[:, start:start + Wo])
            else:
                # TODO(synk): strided lane slice per row; if stride>1 convs
                # become hot, split phases in the wrapper before the DMA.
                rows.append(acc[:, start:start + (Wo - 1) * stride + 1:stride])
        out = rows[0] if Ho == 1 else jnp.concatenate(rows, axis=1)  # (Cout, Ho*Wo)

        if use_bias:
            out = out + bias                # per-channel f32 bias, lane broadcast
        if use_relu:
            out = jnp.maximum(out, 0.0)
        o_ref[b] = out.astype(o_ref.dtype)


def _pick_images_per_step(N, Cin, Cout, L_in, n_out_lanes):
    """Fold images into one grid step to amortize the ~0.35us per-step cost,
    but keep >= 2 grid steps whenever the batch allows (v7x's two TensorCores
    are only used via parallel grid steps) and stay far inside every
    generation's scoped-VMEM budget (v5e default is only 16 MiB)."""
    budget = 12 * 1024 * 1024
    best = 1
    for d in range(1, N + 1):
        if N % d:
            continue
        if N >= 2 and N // d < 2:
            break
        need = (2 * d * Cin * L_in * 2          # double-buffered bf16 input
                + d * Cout * L_in * 4           # f32 accumulators
                + 2 * d * Cout * n_out_lanes * 4)  # double-buffered f32 output
        if need > budget:
            break
        best = d
        if d * n_out_lanes >= 2048:
            break
    return best


def basic_conv_forward(x_nchw, weight_oihw, bn_gamma=None, bn_beta=None,
                       bn_running_mean=None, bn_running_var=None,
                       conv_bias=None, *, stride=1, padding=0, dilation=1,
                       groups=1, relu=True, bn=True, eps=1e-5,
                       compute_dtype=jnp.bfloat16, images_per_step=None):
    """Forward pass of BasicConv. Input and output are NCHW to match PyTorch."""
    N, Cin, H, W = x_nchw.shape
    Cout, Cin_w, KH, KW = weight_oihw.shape
    assert Cin_w == Cin and groups == 1, "groups != 1 not supported"
    assert dilation == 1, "dilation != 1 not supported"

    Hp, Wp = H + 2 * padding, W + 2 * padding
    Ho = (Hp - KH) // stride + 1
    Wo = (Wp - KW) // stride + 1
    HoWo = Ho * Wo

    max_off = (KH - 1) * Wp + (KW - 1)          # largest tap lane offset
    L_in = _round_up(Hp * Wp, 128)              # lane-dense flat slab width
    L_mat = L_in - max_off                      # common tap-window width (>= span)

    # Fold eval-mode BatchNorm (and optional conv bias) into scale/shift.
    if bn:
        scale = (bn_gamma / jnp.sqrt(bn_running_var + eps)).astype(jnp.float32)
        shift = (bn_beta - bn_running_mean * scale).astype(jnp.float32)
        if conv_bias is not None:
            shift = shift + conv_bias.astype(jnp.float32) * scale
    else:
        scale = jnp.ones((Cout,), jnp.float32)
        shift = (conv_bias.astype(jnp.float32) if conv_bias is not None
                 else jnp.zeros((Cout,), jnp.float32))
    use_bias = bn or (conv_bias is not None)

    # BN scale folded into the (tiny) weight; reorder to (KH*KW, Cout, Cin)
    # so the kernel reads one (Cout, Cin) slice per tap.
    w_scaled = weight_oihw.astype(jnp.float32) * scale[:, None, None, None]
    w_taps = jnp.transpose(w_scaled, (2, 3, 0, 1)).reshape(
        KH * KW, Cout, Cin).astype(compute_dtype)
    shift_2d = shift.reshape(Cout, 1)

    # Glue: bf16 cast + spatial zero-pad + flatten + lane pad to a multiple of
    # 128.  One fused HBM pass, no transposes -- input stays channel-major.
    x_pad = jnp.pad(x_nchw.astype(compute_dtype),
                    ((0, 0), (0, 0), (padding, padding), (padding, padding)))
    x_flat = x_pad.reshape(N, Cin, Hp * Wp)
    if L_in > Hp * Wp:
        x_flat = jnp.pad(x_flat, ((0, 0), (0, 0), (0, L_in - Hp * Wp)))

    B = images_per_step or _pick_images_per_step(N, Cin, Cout, L_in, HoWo)
    assert N % B == 0, "images_per_step must divide the batch"

    kernel = functools.partial(
        _conv_bn_relu_kernel, KH=KH, KW=KW, stride=stride, Wp=Wp, L_mat=L_mat,
        Ho=Ho, Wo=Wo, use_bias=use_bias, use_relu=relu)

    out = pl.pallas_call(
        kernel,
        out_shape=jax.ShapeDtypeStruct((N, Cout, HoWo), x_nchw.dtype),
        grid_spec=pltpu.PrefetchScalarGridSpec(
            num_scalar_prefetch=0,
            grid=(N // B,),
            in_specs=[
                pl.BlockSpec((B, Cin, L_in), lambda n: (n, 0, 0)),
                pl.BlockSpec((KH * KW, Cout, Cin), lambda n: (0, 0, 0)),
                pl.BlockSpec((Cout, 1), lambda n: (0, 0)),
            ],
            out_specs=pl.BlockSpec((B, Cout, HoWo), lambda n: (n, 0, 0)),
        ),
        compiler_params=pltpu.CompilerParams(
            dimension_semantics=("parallel",),
            vmem_limit_bytes=48 * 1024 * 1024),
    )(x_flat, w_taps, shift_2d)

    # Free reshape (contiguous) -> NCHW; no transpose, lane-dense HBM writes.
    return out.reshape(N, Cout, Ho, Wo)


if __name__ == "__main__":
    # BasicConv(in_planes=4, out_planes=8, kernel_size=3, stride=1, padding=1,
    #           relu=True, bn=True, bias=False)
    N, Cin, H, W = 2, 4, 16, 16
    Cout, K = 8, 3
    stride, padding = 1, 1
    eps = 1e-5

    key = jax.random.PRNGKey(0)
    k_x, k_w, k_g, k_b, k_m, k_v = jax.random.split(key, 6)

    x = jax.random.normal(k_x, (N, Cin, H, W), jnp.float32)
    weight = jax.random.normal(k_w, (Cout, Cin, K, K), jnp.float32) * 0.1
    gamma = 1.0 + 0.1 * jax.random.normal(k_g, (Cout,), jnp.float32)
    beta = 0.1 * jax.random.normal(k_b, (Cout,), jnp.float32)
    running_mean = 0.1 * jax.random.normal(k_m, (Cout,), jnp.float32)
    running_var = jnp.abs(1.0 + 0.1 * jax.random.normal(k_v, (Cout,), jnp.float32))

    out = basic_conv_forward(x, weight, gamma, beta, running_mean, running_var,
                             stride=stride, padding=padding, relu=True, bn=True)
    out = jax.block_until_ready(out)
    assert out.shape == (N, Cout, H, W)

    # Reference with the same operand quantization the kernel uses (bf16
    # activations, bf16 scale-folded weights); accumulation in both paths is
    # f32, so tolerances are tight.
    s = gamma / jnp.sqrt(running_var + eps)
    b_shift = beta - running_mean * s
    xq = x.astype(jnp.bfloat16).astype(jnp.float32)
    wq = (weight * s[:, None, None, None]).astype(jnp.bfloat16).astype(jnp.float32)
    ref = jax.lax.conv_general_dilated(
        xq, wq, window_strides=(stride, stride),
        padding=((padding, padding), (padding, padding)),
        dimension_numbers=("NCHW", "OIHW", "NCHW"),
        precision=jax.lax.Precision.HIGHEST)
    ref = jnp.maximum(ref + b_shift[None, :, None, None], 0.0)
    assert ref.shape == out.shape
    assert jnp.allclose(out, ref, atol=5e-3, rtol=5e-3), "mismatch vs reference"

    print("KERNEL_OK")
</pallas_src>

<mosaic_0001>
module attributes {stable_mosaic.version = 11 : i64} {
  func.func @_conv_bn_relu_kernel(%arg0: i32, %arg1: memref<1x4x384xbf16, #tpu.memory_space<vmem>>, %arg2: memref<9x8x4xbf16, #tpu.memory_space<vmem>>, %arg3: memref<8x1xf32, #tpu.memory_space<vmem>>, %arg4: memref<1x8x256xf32, #tpu.memory_space<vmem>>) attributes {dimension_semantics = [#tpu.dimension_semantics<parallel>], iteration_bounds = array<i64: 2>, scalar_prefetch = 0 : i64, scratch_operands = 0 : i64, tpu.core_type = #tpu.core_type<tc>, window_params = [{transform_indices = @transform_0, window_bounds = array<i64: 1, 4, 384>}, {pipeline_mode = #tpu.pipeline_mode<synchronous>, transform_indices = @transform_1, window_bounds = array<i64: 9, 8, 4>}, {pipeline_mode = #tpu.pipeline_mode<synchronous>, transform_indices = @transform_2, window_bounds = array<i64: 8, 1>}, {transform_indices = @transform_3, window_bounds = array<i64: 1, 8, 256>}]} {
    %c0 = arith.constant 0 : index
    %c0_0 = arith.constant 0 : index
    %c0_1 = arith.constant 0 : index
    %0 = vector.load %arg2[%c0, %c0_0, %c0_1] : memref<9x8x4xbf16, #tpu.memory_space<vmem>>, vector<9x8x4xbf16>
    %c0_2 = arith.constant 0 : index
    %c0_3 = arith.constant 0 : index
    %1 = vector.load %arg3[%c0_2, %c0_3] : memref<8x1xf32, #tpu.memory_space<vmem>>, vector<8x1xf32>
    %c0_4 = arith.constant 0 : index
    %c0_5 = arith.constant 0 : index
    %c0_6 = arith.constant 0 : index
    %2 = vector.load %arg1[%c0_4, %c0_5, %c0_6] : memref<1x4x384xbf16, #tpu.memory_space<vmem>>, vector<1x4x384xbf16>
    %3 = vector.shape_cast %2 : vector<1x4x384xbf16> to vector<4x384xbf16>
    %4 = vector.extract_strided_slice %3 {offsets = [0, 0], sizes = [4, 346], strides = [1, 1]} : vector<4x384xbf16> to vector<4x346xbf16>
    %5 = vector.extract_strided_slice %0 {offsets = [0, 0, 0], sizes = [1, 8, 4], strides = [1, 1, 1]} : vector<9x8x4xbf16> to vector<1x8x4xbf16>
    %6 = vector.shape_cast %5 : vector<1x8x4xbf16> to vector<8x4xbf16>
    %cst = arith.constant dense<0.000000e+00> : vector<8x346xf32>
    %7 = tpu.matmul %6, %4, %cst {dimension_numbers = #tpu.dot_dimension_numbers<[1], [0], [0], [1], [0, 0, 1, 1], [], []>} : vector<8x4xbf16>, vector<4x346xbf16>, vector<8x346xf32> -> vector<8x346xf32>
    %8 = vector.extract_strided_slice %3 {offsets = [0, 1], sizes = [4, 346], strides = [1, 1]} : vector<4x384xbf16> to vector<4x346xbf16>
    %9 = vector.extract_strided_slice %0 {offsets = [1, 0, 0], sizes = [1, 8, 4], strides = [1, 1, 1]} : vector<9x8x4xbf16> to vector<1x8x4xbf16>
    %10 = vector.shape_cast %9 : vector<1x8x4xbf16> to vector<8x4xbf16>
    %cst_7 = arith.constant dense<0.000000e+00> : vector<8x346xf32>
    %11 = tpu.matmul %10, %8, %cst_7 {dimension_numbers = #tpu.dot_dimension_numbers<[1], [0], [0], [1], [0, 0, 1, 1], [], []>} : vector<8x4xbf16>, vector<4x346xbf16>, vector<8x346xf32> -> vector<8x346xf32>
    %12 = arith.addf %7, %11 : vector<8x346xf32>
    %13 = vector.extract_strided_slice %3 {offsets = [0, 2], sizes = [4, 346], strides = [1, 1]} : vector<4x384xbf16> to vector<4x346xbf16>
    %14 = vector.extract_strided_slice %0 {offsets = [2, 0, 0], sizes = [1, 8, 4], strides = [1, 1, 1]} : vector<9x8x4xbf16> to vector<1x8x4xbf16>
    %15 = vector.shape_cast %14 : vector<1x8x4xbf16> to vector<8x4xbf16>
    %cst_8 = arith.constant dense<0.000000e+00> : vector<8x346xf32>
    %16 = tpu.matmul %15, %13, %cst_8 {dimension_numbers = #tpu.dot_dimension_numbers<[1], [0], [0], [1], [0, 0, 1, 1], [], []>} : vector<8x4xbf16>, vector<4x346xbf16>, vector<8x346xf32> -> vector<8x346xf32>
    %17 = arith.addf %12, %16 : vector<8x346xf32>
    %18 = vector.extract_strided_slice %3 {offsets = [0, 18], sizes = [4, 346], strides = [1, 1]} : vector<4x384xbf16> to vector<4x346xbf16>
    %19 = vector.extract_strided_slice %0 {offsets = [3, 0, 0], sizes = [1, 8, 4], strides = [1, 1, 1]} : vector<9x8x4xbf16> to vector<1x8x4xbf16>
    %20 = vector.shape_cast %19 : vector<1x8x4xbf16> to vector<8x4xbf16>
    %cst_9 = arith.constant dense<0.000000e+00> : vector<8x346xf32>
    %21 = tpu.matmul %20, %18, %cst_9 {dimension_numbers = #tpu.dot_dimension_numbers<[1], [0], [0], [1], [0, 0, 1, 1], [], []>} : vector<8x4xbf16>, vector<4x346xbf16>, vector<8x346xf32> -> vector<8x346xf32>
    %22 = arith.addf %17, %21 : vector<8x346xf32>
    %23 = vector.extract_strided_slice %3 {offsets = [0, 19], sizes = [4, 346], strides = [1, 1]} : vector<4x384xbf16> to vector<4x346xbf16>
    %24 = vector.extract_strided_slice %0 {offsets = [4, 0, 0], sizes = [1, 8, 4], strides = [1, 1, 1]} : vector<9x8x4xbf16> to vector<1x8x4xbf16>
    %25 = vector.shape_cast %24 : vector<1x8x4xbf16> to vector<8x4xbf16>
    %cst_10 = arith.constant dense<0.000000e+00> : vector<8x346xf32>
    %26 = tpu.matmul %25, %23, %cst_10 {dimension_numbers = #tpu.dot_dimension_numbers<[1], [0], [0], [1], [0, 0, 1, 1], [], []>} : vector<8x4xbf16>, vector<4x346xbf16>, vector<8x346xf32> -> vector<8x346xf32>
    %27 = arith.addf %22, %26 : vector<8x346xf32>
    %28 = vector.extract_strided_slice %3 {offsets = [0, 20], sizes = [4, 346], strides = [1, 1]} : vector<4x384xbf16> to vector<4x346xbf16>
    %29 = vector.extract_strided_slice %0 {offsets = [5, 0, 0], sizes = [1, 8, 4], strides = [1, 1, 1]} : vector<9x8x4xbf16> to vector<1x8x4xbf16>
    %30 = vector.shape_cast %29 : vector<1x8x4xbf16> to vector<8x4xbf16>
    %cst_11 = arith.constant dense<0.000000e+00> : vector<8x346xf32>
    %31 = tpu.matmul %30, %28, %cst_11 {dimension_numbers = #tpu.dot_dimension_numbers<[1], [0], [0], [1], [0, 0, 1, 1], [], []>} : vector<8x4xbf16>, vector<4x346xbf16>, vector<8x346xf32> -> vector<8x346xf32>
    %32 = arith.addf %27, %31 : vector<8x346xf32>
    %33 = vector.extract_strided_slice %3 {offsets = [0, 36], sizes = [4, 346], strides = [1, 1]} : vector<4x384xbf16> to vector<4x346xbf16>
    %34 = vector.extract_strided_slice %0 {offsets = [6, 0, 0], sizes = [1, 8, 4], strides = [1, 1, 1]} : vector<9x8x4xbf16> to vector<1x8x4xbf16>
    %35 = vector.shape_cast %34 : vector<1x8x4xbf16> to vector<8x4xbf16>
    %cst_12 = arith.constant dense<0.000000e+00> : vector<8x346xf32>
    %36 = tpu.matmul %35, %33, %cst_12 {dimension_numbers = #tpu.dot_dimension_numbers<[1], [0], [0], [1], [0, 0, 1, 1], [], []>} : vector<8x4xbf16>, vector<4x346xbf16>, vector<8x346xf32> -> vector<8x346xf32>
    %37 = arith.addf %32, %36 : vector<8x346xf32>
    %38 = vector.extract_strided_slice %3 {offsets = [0, 37], sizes = [4, 346], strides = [1, 1]} : vector<4x384xbf16> to vector<4x346xbf16>
    %39 = vector.extract_strided_slice %0 {offsets = [7, 0, 0], sizes = [1, 8, 4], strides = [1, 1, 1]} : vector<9x8x4xbf16> to vector<1x8x4xbf16>
    %40 = vector.shape_cast %39 : vector<1x8x4xbf16> to vector<8x4xbf16>
    %cst_13 = arith.constant dense<0.000000e+00> : vector<8x346xf32>
    %41 = tpu.matmul %40, %38, %cst_13 {dimension_numbers = #tpu.dot_dimension_numbers<[1], [0], [0], [1], [0, 0, 1, 1], [], []>} : vector<8x4xbf16>, vector<4x346xbf16>, vector<8x346xf32> -> vector<8x346xf32>
    %42 = arith.addf %37, %41 : vector<8x346xf32>
    %43 = vector.extract_strided_slice %3 {offsets = [0, 38], sizes = [4, 346], strides = [1, 1]} : vector<4x384xbf16> to vector<4x346xbf16>
    %44 = vector.extract_strided_slice %0 {offsets = [8, 0, 0], sizes = [1, 8, 4], strides = [1, 1, 1]} : vector<9x8x4xbf16> to vector<1x8x4xbf16>
    %45 = vector.shape_cast %44 : vector<1x8x4xbf16> to vector<8x4xbf16>
    %cst_14 = arith.constant dense<0.000000e+00> : vector<8x346xf32>
    %46 = tpu.matmul %45, %43, %cst_14 {dimension_numbers = #tpu.dot_dimension_numbers<[1], [0], [0], [1], [0, 0, 1, 1], [], []>} : vector<8x4xbf16>, vector<4x346xbf16>, vector<8x346xf32> -> vector<8x346xf32>
    %47 = arith.addf %42, %46 : vector<8x346xf32>
    %48 = vector.extract_strided_slice %47 {offsets = [0, 0], sizes = [8, 16], strides = [1, 1]} : vector<8x346xf32> to vector<8x16xf32>
    %49 = vector.extract_strided_slice %47 {offsets = [0, 18], sizes = [8, 16], strides = [1, 1]} : vector<8x346xf32> to vector<8x16xf32>
    %50 = vector.extract_strided_slice %47 {offsets = [0, 36], sizes = [8, 16], strides = [1, 1]} : vector<8x346xf32> to vector<8x16xf32>
    %51 = vector.extract_strided_slice %47 {offsets = [0, 54], sizes = [8, 16], strides = [1, 1]} : vector<8x346xf32> to vector<8x16xf32>
    %52 = vector.extract_strided_slice %47 {offsets = [0, 72], sizes = [8, 16], strides = [1, 1]} : vector<8x346xf32> to vector<8x16xf32>
    %53 = vector.extract_strided_slice %47 {offsets = [0, 90], sizes = [8, 16], strides = [1, 1]} : vector<8x346xf32> to vector<8x16xf32>
    %54 = vector.extract_strided_slice %47 {offsets = [0, 108], sizes = [8, 16], strides = [1, 1]} : vector<8x346xf32> to vector<8x16xf32>
    %55 = vector.extract_strided_slice %47 {offsets = [0, 126], sizes = [8, 16], strides = [1, 1]} : vector<8x346xf32> to vector<8x16xf32>
    %56 = vector.extract_strided_slice %47 {offsets = [0, 144], sizes = [8, 16], strides = [1, 1]} : vector<8x346xf32> to vector<8x16xf32>
    %57 = vector.extract_strided_slice %47 {offsets = [0, 162], sizes = [8, 16], strides = [1, 1]} : vector<8x346xf32> to vector<8x16xf32>
    %58 = vector.extract_strided_slice %47 {offsets = [0, 180], sizes = [8, 16], strides = [1, 1]} : vector<8x346xf32> to vector<8x16xf32>
    %59 = vector.extract_strided_slice %47 {offsets = [0, 198], sizes = [8, 16], strides = [1, 1]} : vector<8x346xf32> to vector<8x16xf32>
    %60 = vector.extract_strided_slice %47 {offsets = [0, 216], sizes = [8, 16], strides = [1, 1]} : vector<8x346xf32> to vector<8x16xf32>
    %61 = vector.extract_strided_slice %47 {offsets = [0, 234], sizes = [8, 16], strides = [1, 1]} : vector<8x346xf32> to vector<8x16xf32>
    %62 = vector.extract_strided_slice %47 {offsets = [0, 252], sizes = [8, 16], strides = [1, 1]} : vector<8x346xf32> to vector<8x16xf32>
    %63 = vector.extract_strided_slice %47 {offsets = [0, 270], sizes = [8, 16], strides = [1, 1]} : vector<8x346xf32> to vector<8x16xf32>
    %64 = tpu.concatenate %48, %49, %50, %51, %52, %53, %54, %55, %56, %57, %58, %59, %60, %61, %62, %63 in 1 : vector<8x16xf32>, vector<8x16xf32>, vector<8x16xf32>, vector<8x16xf32>, vector<8x16xf32>, vector<8x16xf32>, vector<8x16xf32>, vector<8x16xf32>, vector<8x16xf32>, vector<8x16xf32>, vector<8x16xf32>, vector<8x16xf32>, vector<8x16xf32>, vector<8x16xf32>, vector<8x16xf32>, vector<8x16xf32> -> vector<8x256xf32>
    %65 = vector.broadcast %1 : vector<8x1xf32> to vector<8x256xf32>
    %66 = arith.addf %64, %65 : vector<8x256xf32>
    %cst_15 = arith.constant 0.000000e+00 : f32
    %67 = vector.broadcast %cst_15 : f32 to vector<8x256xf32>
    %68 = arith.maximumf %66, %67 : vector<8x256xf32>
    %c0_16 = arith.constant 0 : index
    %c0_17 = arith.constant 0 : index
    %c0_18 = arith.constant 0 : index
    %69 = vector.load %arg4[%c0_16, %c0_17, %c0_18] : memref<1x8x256xf32, #tpu.memory_space<vmem>>, vector<1x8x256xf32>
    %70 = vector.shape_cast %69 : vector<1x8x256xf32> to vector<8x256xf32>
    %71 = vector.shape_cast %68 : vector<8x256xf32> to vector<1x8x256xf32>
    tpu.vector_store %arg4[%c0_16, %c0_17, %c0_18], %71 {strides = array<i32>} : memref<1x8x256xf32, #tpu.memory_space<vmem>>, vector<1x8x256xf32>,
    return
  }
  func.func @transform_0(%arg0: i32) -> (i32, i32, i32) {
    %c0_i32 = arith.constant 0 : i32
    %c0_i32_0 = arith.constant 0 : i32
    %c0_i32_1 = arith.constant 0 : i32
    return %arg0, %c0_i32, %c0_i32_0 : i32, i32, i32
  }
  func.func @transform_1(%arg0: i32) -> (i32, i32, i32) {
    %c0_i32 = arith.constant 0 : i32
    %c0_i32_0 = arith.constant 0 : i32
    %c0_i32_1 = arith.constant 0 : i32
    %c0_i32_2 = arith.constant 0 : i32
    return %c0_i32, %c0_i32_0, %c0_i32_1 : i32, i32, i32
  }
  func.func @transform_2(%arg0: i32) -> (i32, i32) {
    %c0_i32 = arith.constant 0 : i32
    %c0_i32_0 = arith.constant 0 : i32
    %c0_i32_1 = arith.constant 0 : i32
    return %c0_i32, %c0_i32_0 : i32, i32
  }
  func.func @transform_3(%arg0: i32) -> (i32, i32, i32) {
    %c0_i32 = arith.constant 0 : i32
    %c0_i32_0 = arith.constant 0 : i32
    %c0_i32_1 = arith.constant 0 : i32
    return %arg0, %c0_i32, %c0_i32_0 : i32, i32, i32
  }
}

</mosaic_0001>

<bundles_post_ra>
// kernel: tpu_custom_call.1
= control target key start
LH: loop header
LB: loop body
LE: loop exit
PB: predicated region body
PF: predicated region fallthrough
CT: control target
= control target key end

     0   :  { %8 = vsyncpa [#allocation3], 0  ;;  %s1878_s0 = inlined_call_operand.vmem [shape: bf16[2,4,384], index: 0, kind: input, shape index: {}]   ;;  %s1879_s1 = inlined_call_operand.vmem [shape: bf16[9,8,4], index: 1, kind: input, shape index: {}]   ;;  %s1880_s2 = inlined_call_operand.vmem [shape: f32[8,1], index: 2, kind: input, shape index: {}]   ;;  %s1881_s3 = inlined_call_operand.hbm [shape: f32[2,8,256], index: 3, kind: output, shape index: {}]  }
   0x1   :  { %10 = vsyncpa [#allocation3 + $0x1], 0  ;;  %s1643_s12 = smov 0   ;;  %s1645_s13 = smov 0  }
   0x2   :  { %s1647_s14 = smov 0   ;;  %s1649_s15 = smov 0  }
   0x3 LB: > { %s1664_s16 = sadd.s32 4294967295, %s1596_s15   ;;  %s1292_s17 = sadd.s32 4294967294, %s1596_s15   ;;  %s1596_s15 = sphi %s1649_s15, %s1887_s15   ;;  %s1592_s14 = sphi %s1647_s14, %s1886_s14   ;;  %s1588_s13 = sphi %s1645_s13, %s1885_s13   ;;  %s1584_s12 = sphi %s1643_s12, %s1884_s12  }
   0x4   : > { %s1668_s18 = sadd.s32 1, %s1596_s15   ;;  %s91_s19 = sadd.s32 1, %s1592_s14 }
   0x5   : > { %s88_s20 = ssub.s32 %s1596_s15, %s1668_s18  ;;  %p101_p0 = scmp.ne.s32.totalorder %s1592_s14, %s1588_s13 }
   0x6   : > { %p89_p1 = scmp.eq.s32.totalorder %s88_s20, 0  ;;  %p102_p2 = scmp.eq.s32.totalorder %s1664_s16, 1 }
   0x7   : > { %p107_p3 = scmp.ne.s32.totalorder %s1588_s13, %s1584_s12  ;;  %p108_p4 = scmp.eq.s32.totalorder %s1292_s17, 1 }
   0x8   : > { %s1679_s21 = scalar_select %p89_p1, %s1592_s14, %s91_s19  }
   0x9   : > { %p1681_p5 = por %p102_p2, %p101_p0  ;;  %p1685_p6 = por %p108_p4, %p107_p3 }
   0xa   : > { %p1295_p7 = scmp.ge.s32.totalorder %s1596_s15, 1  ;;  %p140_p8 = scmp.lt.s32.totalorder %s1596_s15, 3 }
   0xc   : > { %p141_p9 = pnand %p1295_p7, %p140_p8 }
   0xd   : > { %p164_p10 = scmp.lt.s32.totalorder (!%p141_p9), %s1664_s16, 1  ;;  %v186_v0 = vlaneseq (!%p141_p9)  ;;  %v1598_v1 = vmov (!%p141_p9), 1983009808   ;;  %v1599_v3 = vmov (!%p141_p9), 0.0   ;;  %vm1600_vm0 = vmmov (!%p141_p9), 0   ;;  %s1602_s29 = smov (!%p141_p9), 127  }
   0xe   : > { %144 = sbr.rel (%p141_p9) target bundleno = 628 (0x274), region = 32  ;;  %v184_v2 = vunpack.c.l.s4 (!%p141_p9), %v1598_v1  ;;  %1349 = vmatprep.subr.bf16.mxu1 (!%p141_p9), %v1599_v3  ;;  %1351 = vmatprep.mubr.msk.bf16.mxu1 (!%p141_p9), %vm1600_vm0, %v1599_v3  ;;  %v1601_v6 = vmov (!%p141_p9), 0   ;;  %s1603_s30 = smov (!%p141_p9), 126   ;;  %v179_v13 = vld [vmem:[%s1880_s2] sm:$0xff] (!%p141_p9)  ;;  %vm211_vm1 = vcmask (!%p141_p9), 1041408   ;;  %vm204_vm2 = vcmask (!%p141_p9), 1039360  }
   0xf   : > { %v187_v4 = vshrl.u32 (!%p141_p9), %v186_v0, 7  ;;  %253 = vmatprep.mubr.bf16.mxu0 (!%p141_p9), %v1601_v6  ;;  %1531 = vset.pattern.permute.xlu1 (!%p141_p9), %v1601_v6  ;;  %s1604_s4 = smov (!%p141_p9), 110   ;;  %s1605_s5 = smov (!%p141_p9), 109   ;;  %v171_v18 = vld [vmem:[%s1879_s1 + $0x4] sm:$0xf] (!%p141_p9)  ;;  %vm207_vm3 = vcmask (!%p141_p9), 31744  }
  0x10   : > { %v185_v5 = vunpack.c.0.s8 (!%p141_p9), %v184_v2  ;;  %1532 = vset.pattern.permute.xlu0 (!%p141_p9), %v1601_v6  ;;  %s1606_s6 = smov (!%p141_p9), 108   ;;  %s1607_s7 = smov (!%p141_p9), 92   ;;  %vm401_vm4 = vcmask (!%p141_p9), 1031168   ;;  %v170_v29 = vld [vmem:[%s1879_s1] sm:$0xf] (!%p141_p9)  ;;  %vm506_vm5 = vcmask (!%p141_p9), 900096  }
  0x11   : > { %s1608_s8 = smov (!%p141_p9), 91   ;;  %s1609_s9 = smov (!%p141_p9), 90   ;;  %v172_v37 = vld [vmem:[%s1879_s1 + $0x8] sm:$0xf] (!%p141_p9)  ;;  %vm611_vm6 = vcmask (!%p141_p9), 891904   ;;  %vm716_vm7 = vcmask (!%p141_p9), 883712  }
  0x12   : > { %v188_v7 = vsub.s32 (!%p141_p9), %v185_v5, %v187_v4  ;;  %v173_v45 = vld [vmem:[%s1879_s1 + $0xc] sm:$0xf] (!%p141_p9)  ;;  %v174_v53 = vld [vmem:[%s1879_s1 + $0x10] sm:$0xf] (!%p141_p9)  ;;  %vm821_vm8 = vcmask (!%p141_p9), 752640   ;;  %vm926_vm9 = vcmask (!%p141_p9), 744448  }
  0x13   : > { %v175_v61 = vld [vmem:[%s1879_s1 + $0x14] sm:$0xf] (!%p141_p9)  ;;  %vm1031_vm10 = vcmask (!%p141_p9), 736256   ;;  %s1612_s26 = smov (!%p141_p9), 124   ;;  %s1613_s27 = smov (!%p141_p9), 112   ;;  %vm1186_vm11 = vcmask (!%p141_p9), 130048  }
  0x14   : > { %s1621_s10 = smov (!%p141_p9), 98   ;;  %vm1188_vm12 = vcmask (!%p141_p9), 261120   ;;  %vm1190_vm13 = vcmask (!%p141_p9), 392192   ;;  %vm1180_vm14 = vcmask (!%p141_p9), 818176   ;;  %vm1192_vm15 = vcmask (!%p141_p9), 523264   ;;  %s1330_s11 = sshll.u32 (!%p141_p9), %s1664_s16, 8 }
  0x15   : > { %s165_s24 = scalar_select %p164_p10, %s1664_s16, 1 }
  0x16   : > { %s1622_s16 = smov [#allocation2]  }
  0x17   : > { %s1467_s25 = smul.u32 6, %s165_s24  ;;  %s1610_s24 = smov 100  }
  0x19   : > { %s168_s28 = scalar_lea.vmem %s1878_s0, %s1467_s25  ;;  %s1611_s25 = smov 114  }
  0x1a   : > { %v180_v8 = vld [vmem:[%s168_s28] sm:$0x3f]  ;;  %s1614_s28 = smov 122  }
  0x1b   : > { %v189_v9 = vrot.slane %v180_v8, %v188_v7  ;;  %v182_v10 = vcombine.high %v180_v8, %v180_v8 }
  0x1d   : > { %198 = vrot.lane.b32.xlu0 %v189_v9, %s1602_s29  ;;  %v196_v11 = vrot.slane %v182_v10, %v188_v7  ;;  %v197_v12 = vcombine.high %v189_v9, %v189_v9  ;;  %v306_v24 = vsel %vm211_vm1, %v189_v9, 0  ;;  %v176_v7 = vld [vmem:[%s1879_s1 + $0x18] sm:$0xf] }
  0x1f   : > { %202 = vrot.lane.b32.xlu1 %v196_v11, %s1602_s29  ;;  %v312_v21 = vsel %vm211_vm1, %v196_v11, 0 }
  0x21   : > { %200 = vrot.lane.b32.xlu0 %v197_v12, %s1602_s29  ;;  %s1615_s29 = smov 120  }
  0x23   : > { %395 = vrot.lane.b32.xlu1 %v189_v9, %s1603_s30 }
  0x25   : > { %397 = vrot.lane.b32.xlu0 %v197_v12, %s1603_s30 }
  0x27   : > { %399 = vrot.lane.b32.xlu1 %v196_v11, %s1603_s30 }
  0x29   : > { %500 = vrot.lane.b32.xlu0 %v189_v9, %s1604_s4 }
  0x2b   : > { %502 = vrot.lane.b32.xlu1 %v197_v12, %s1604_s4 }
  0x2d   : > { %504 = vrot.lane.b32.xlu0 %v196_v11, %s1604_s4 }
  0x2f   : > { %605 = vrot.lane.b32.xlu1 %v189_v9, %s1605_s5 }
  0x31   : > { %607 = vrot.lane.b32.xlu0 %v197_v12, %s1605_s5 }
  0x33   : > { %609 = vrot.lane.b32.xlu1 %v196_v11, %s1605_s5  ;;  %s1616_s5 = smov 106  }
  0x35   : > { %710 = vrot.lane.b32.xlu0 %v189_v9, %s1606_s6 }
  0x37   : > { %712 = vrot.lane.b32.xlu1 %v197_v12, %s1606_s6 }
  0x39   : > { %714 = vrot.lane.b32.xlu0 %v196_v11, %s1606_s6 }
  0x3b   : > { %815 = vrot.lane.b32.xlu1 %v189_v9, %s1607_s7 }
  0x3d   : > { %817 = vrot.lane.b32.xlu0 %v197_v12, %s1607_s7 }
  0x3f   : > { %819 = vrot.lane.b32.xlu1 %v196_v11, %s1607_s7  ;;  %s1617_s7 = smov 118  }
  0x41   : > { %920 = vrot.lane.b32.xlu0 %v189_v9, %s1608_s8 }
  0x43   : > { %922 = vrot.lane.b32.xlu1 %v197_v12, %s1608_s8 }
  0x45   : > { %924 = vrot.lane.b32.xlu0 %v196_v11, %s1608_s8  ;;  %s1619_s8 = smov 116  }
  0x47   : > { %1025 = vrot.lane.b32.xlu1 %v189_v9, %s1609_s9 }
  0x49   : > { %1027 = vrot.lane.b32.xlu0 %v197_v12, %s1609_s9 }
  0x4b   : > { %1029 = vrot.lane.b32.xlu1 %v196_v11, %s1609_s9  ;;  %s1620_s9 = smov 102  }
  0x4f   : > { %1209 = vperm.xlu1 %1531, %v179_v13  }
  0x8f   : > { %v199_v14 = vpop.permute.xlu0 %198 }
  0x91   : > { %v203_v15 = vpop.permute.xlu1 %202 }
  0x92   : > { %v219_v16 = vsel %vm211_vm1, %v203_v15, 0 }
  0x93   : > { %v201_v17 = vpop.permute.xlu0 %200  ;;  %1350 = vmatpush3.bf16.msra.mxu1 %v219_v16 }
  0x94   : > { %v206_v19 = vsel %vm204_vm2, %v201_v17, %v203_v15  ;;  %v205_v20 = vsel %vm204_vm2, %v199_v14, %v201_v17  ;;  %1355 = vmatprep.subr.bf16.mxu1 %v1599_v3  ;;  %v177_v14 = vld [vmem:[%s1879_s1 + $0x1c] sm:$0xf]  ;;  %vm1196_vm2 = vcmask 785408  }
  0x95   : > { %1298 = vmatprep.subr.msk.bf16.mxu0 %vm211_vm1, %v206_v19  ;;  %v213_v22 = vsel %vm211_vm1, %v205_v20, 0  ;;  %v396_v23 = vpop.permute.xlu1 %395 }
  0x96   : > { %222 = vmatpush1.bf16.msra.mxu0 %v213_v22  ;;  %1352 = vmatmul.mubr.msk.bf16.vlgmr.msra.gmra.mrb[0].mxu1 %vm207_vm3, %v171_v18 }
  0x97   : > { %1301 = vmatprep.subr.msk.bf16.mxu0 %vm211_vm1, %v197_v12  ;;  %v398_v25 = vpop.permute.xlu0 %397  ;;  %1356 = vmatpush3.bf16.msra.mxu1 %v312_v21 }
  0x98   : > { %1357 = vmatprep.mubr.msk.bf16.mxu1 %vm1600_vm0, %v1599_v3  ;;  %1361 = vmatprep.subr.bf16.mxu1 %v1599_v3  ;;  %v402_v30 = vsel %vm401_vm4, %v396_v23, %v398_v25 }
  0x99   : > { %1299 = vmatmul.mubr.msk.bf16.vlgmr.msra.gmra.mrb[0].mxu0 %vm207_vm3, %v171_v18  ;;  %v400_v26 = vpop.permute.xlu1 %399  ;;  %v408_v34 = vsel %vm211_vm1, %v402_v30, 0  ;;  %v178_v18 = vld [vmem:[%s1879_s1 + $0x20] sm:$0xf] }
  0x9a   : > { %315 = vmatpush1.bf16.msra.mxu0 %v306_v24  ;;  %v403_v27 = vsel %vm401_vm4, %v398_v25, %v400_v26  ;;  %346 = vmatprep.mubr.bf16.mxu0 %v1601_v6  ;;  %v414_v31 = vsel %vm211_vm1, %v400_v26, 0 }
  0x9b   : > { %1304 = vmatprep.subr.msk.bf16.mxu0 %vm211_vm1, %v403_v27  ;;  %v501_v28 = vpop.permute.xlu0 %500 }
  0x9d   : > { %v503_v32 = vpop.permute.xlu1 %502 }
  0x9e   : > { %v507_v38 = vsel %vm506_vm5, %v501_v28, %v503_v32 }
  0x9f   : > { %v505_v33 = vpop.permute.xlu0 %504  ;;  %v513_v42 = vsel %vm211_vm1, %v507_v38, 0 }
  0xa0   : > { %v508_v35 = vsel %vm506_vm5, %v503_v32, %v505_v33  ;;  %v519_v39 = vsel %vm211_vm1, %v505_v33, 0 }
  0xa1   : > { %v606_v36 = vpop.permute.xlu1 %605 }
  0xa2   : > { %1358 = vmatmul.mubr.msk.bf16.vlgmr.msra.gmra.mrb[0].mxu1 %vm207_vm3, %v170_v29 }
  0xa3   : > { %1362 = vmatpush3.bf16.msra.mxu1 %v414_v31  ;;  %1363 = vmatprep.mubr.msk.bf16.mxu1 %vm1600_vm0, %v1599_v3  ;;  %v608_v40 = vpop.permute.xlu0 %607 }
  0xa4   : > { %1367 = vmatprep.subr.bf16.mxu1 %v1599_v3  ;;  %v612_v46 = vsel %vm611_vm6, %v606_v36, %v608_v40 }
  0xa5   : > { %1302 = vmatmul.mubr.msk.bf16.vlgmr.msra.gmra.mrb[0].mxu0 %vm207_vm3, %v170_v29  ;;  %v610_v41 = vpop.permute.xlu1 %609  ;;  %v618_v50 = vsel %vm211_vm1, %v612_v46, 0 }
  0xa6   : > { %417 = vmatpush1.bf16.msra.mxu0 %v408_v34  ;;  %448 = vmatprep.mubr.bf16.mxu0 %v1601_v6  ;;  %v613_v43 = vsel %vm611_vm6, %v608_v40, %v610_v41  ;;  %v624_v47 = vsel %vm211_vm1, %v610_v41, 0 }
  0xa7   : > { %1307 = vmatprep.subr.msk.bf16.mxu0 %vm211_vm1, %v508_v35  ;;  %v711_v44 = vpop.permute.xlu0 %710 }
  0xa9   : > { %v713_v48 = vpop.permute.xlu1 %712 }
  0xaa   : > { %v717_v54 = vsel %vm716_vm7, %v711_v44, %v713_v48 }
  0xab   : > { %v715_v49 = vpop.permute.xlu0 %714  ;;  %v723_v58 = vsel %vm211_vm1, %v717_v54, 0 }
  0xac   : > { %v718_v51 = vsel %vm716_vm7, %v713_v48, %v715_v49  ;;  %v729_v55 = vsel %vm211_vm1, %v715_v49, 0 }
  0xad   : > { %v816_v52 = vpop.permute.xlu1 %815 }
  0xae   : > { %1364 = vmatmul.mubr.msk.bf16.vlgmr.msra.gmra.mrb[0].mxu1 %vm207_vm3, %v172_v37 }
  0xaf   : > { %1368 = vmatpush3.bf16.msra.mxu1 %v519_v39  ;;  %1369 = vmatprep.mubr.msk.bf16.mxu1 %vm1600_vm0, %v1599_v3  ;;  %v818_v56 = vpop.permute.xlu0 %817 }
  0xb0   : > { %1373 = vmatprep.subr.bf16.mxu1 %v1599_v3  ;;  %v822_v62 = vsel %vm821_vm8, %v816_v52, %v818_v56 }
  0xb1   : > { %1305 = vmatmul.mubr.msk.bf16.vlgmr.msra.gmra.mrb[0].mxu0 %vm207_vm3, %v172_v37  ;;  %v820_v57 = vpop.permute.xlu1 %819  ;;  %v828_v2 = vsel %vm211_vm1, %v822_v62, 0 }
  0xb2   : > { %522 = vmatpush1.bf16.msra.mxu0 %v513_v42  ;;  %553 = vmatprep.mubr.bf16.mxu0 %v1601_v6  ;;  %v823_v59 = vsel %vm821_vm8, %v818_v56, %v820_v57  ;;  %v834_v63 = vsel %vm211_vm1, %v820_v57, 0 }
  0xb3   : > { %1310 = vmatprep.subr.msk.bf16.mxu0 %vm211_vm1, %v613_v43  ;;  %v921_v60 = vpop.permute.xlu0 %920 }
  0xb5   : > { %v923_v0 = vpop.permute.xlu1 %922 }
  0xb6   : > { %v927_v8 = vsel %vm926_vm9, %v921_v60, %v923_v0 }
  0xb7   : > { %v925_v1 = vpop.permute.xlu0 %924  ;;  %v933_v12 = vsel %vm211_vm1, %v927_v8, 0 }
  0xb8   : > { %v928_v4 = vsel %vm926_vm9, %v923_v0, %v925_v1  ;;  %v939_v9 = vsel %vm211_vm1, %v925_v1, 0 }
  0xb9   : > { %v1026_v5 = vpop.permute.xlu1 %1025 }
  0xba   : > { %1370 = vmatmul.mubr.msk.bf16.vlgmr.msra.gmra.mrb[0].mxu1 %vm207_vm3, %v173_v45 }
  0xbb   : > { %1374 = vmatpush3.bf16.msra.mxu1 %v624_v47  ;;  %1375 = vmatprep.mubr.msk.bf16.mxu1 %vm1600_vm0, %v1599_v3  ;;  %v1028_v10 = vpop.permute.xlu0 %1027 }
  0xbc   : > { %1379 = vmatprep.subr.bf16.mxu1 %v1599_v3  ;;  %v1032_v15 = vsel %vm1031_vm10, %v1026_v5, %v1028_v10 }
  0xbd   : > { %1308 = vmatmul.mubr.msk.bf16.vlgmr.msra.gmra.mrb[0].mxu0 %vm207_vm3, %v173_v45  ;;  %v1030_v11 = vpop.permute.xlu1 %1029  ;;  %v1038_v17 = vsel %vm211_vm1, %v1032_v15, 0 }
  0xbe   : > { %627 = vmatpush1.bf16.msra.mxu0 %v618_v50  ;;  %658 = vmatprep.mubr.bf16.mxu0 %v1601_v6  ;;  %v1033_v13 = vsel %vm1031_vm10, %v1028_v10, %v1030_v11  ;;  %v1044_v16 = vsel %vm211_vm1, %v1030_v11, 0 }
  0xbf   : > { %1313 = vmatprep.subr.msk.bf16.mxu0 %vm211_vm1, %v718_v51 }
  0xc6   : > { %1376 = vmatmul.mubr.msk.bf16.vlgmr.msra.gmra.mrb[0].mxu1 %vm207_vm3, %v174_v53 }
  0xc7   : > { %1380 = vmatpush3.bf16.msra.mxu1 %v729_v55  ;;  %1381 = vmatprep.mubr.msk.bf16.mxu1 %vm1600_vm0, %v1599_v3 }
  0xc8   : > { %1385 = vmatprep.subr.bf16.mxu1 %v1599_v3 }
  0xc9   : > { %1311 = vmatmul.mubr.msk.bf16.vlgmr.msra.gmra.mrb[0].mxu0 %vm207_vm3, %v174_v53 }
  0xca   : > { %732 = vmatpush1.bf16.msra.mxu0 %v723_v58  ;;  %763 = vmatprep.mubr.bf16.mxu0 %v1601_v6 }
  0xcb   : > { %1316 = vmatprep.subr.msk.bf16.mxu0 %vm211_vm1, %v823_v59 }
  0xce   : > { %v1210_v25 = vpop.permute.xlu1 %1209 }
  0xd2   : > { %1382 = vmatmul.mubr.msk.bf16.vlgmr.msra.gmra.mrb[0].mxu1 %vm207_vm3, %v175_v61 }
  0xd3   : > { %1386 = vmatpush3.bf16.msra.mxu1 %v834_v63  ;;  %1387 = vmatprep.mubr.msk.bf16.mxu1 %vm1600_vm0, %v1599_v3 }
  0xd4   : > { %1391 = vmatprep.subr.bf16.mxu1 %v1599_v3 }
  0xd5   : > { %1314 = vmatmul.mubr.msk.bf16.vlgmr.msra.gmra.mrb[0].mxu0 %vm207_vm3, %v175_v61 }
  0xd6   : > { %837 = vmatpush1.bf16.msra.mxu0 %v828_v2  ;;  %868 = vmatprep.mubr.bf16.mxu0 %v1601_v6 }
  0xd7   : > { %1319 = vmatprep.subr.msk.bf16.mxu0 %vm211_vm1, %v928_v4 }
  0xde   : > { %1388 = vmatmul.mubr.msk.bf16.vlgmr.msra.gmra.mrb[0].mxu1 %vm207_vm3, %v176_v7 }
  0xdf   : > { %1392 = vmatpush3.bf16.msra.mxu1 %v939_v9  ;;  %1393 = vmatprep.mubr.msk.bf16.mxu1 %vm1600_vm0, %v1599_v3 }
  0xe0   : > { %1397 = vmatprep.subr.bf16.mxu1 %v1599_v3 }
  0xe1   : > { %1317 = vmatmul.mubr.msk.bf16.vlgmr.msra.gmra.mrb[0].mxu0 %vm207_vm3, %v176_v7 }
  0xe2   : > { %942 = vmatpush1.bf16.msra.mxu0 %v933_v12  ;;  %973 = vmatprep.mubr.bf16.mxu0 %v1601_v6 }
  0xe3   : > { %1322 = vmatprep.subr.msk.bf16.mxu0 %vm211_vm1, %v1033_v13  ;;  %vm1198_vm1 = vcmask 916480  }
  0xea   : > { %1394 = vmatmul.mubr.msk.bf16.vlgmr.msra.gmra.mrb[0].mxu1 %vm207_vm3, %v177_v14 }
  0xeb   : > { %1398 = vmatpush3.bf16.msra.mxu1 %v1044_v16  ;;  %1399 = vmatprep.mubr.msk.bf16.mxu1 %vm1600_vm0, %v1599_v3  ;;  %vm1194_vm0 = vcmask 654336  }
  0xed   : > { %1320 = vmatmul.mubr.msk.bf16.vlgmr.msra.gmra.mrb[0].mxu0 %vm207_vm3, %v177_v14 }
  0xee   : > { %1047 = vmatpush1.bf16.msra.mxu0 %v1038_v17  ;;  %1078 = vmatprep.mubr.bf16.mxu0 %v1601_v6 }
  0xf6   : > { %1400 = vmatmul.mubr.msk.bf16.vlgmr.msra.gmra.mrb[0].mxu1 %vm207_vm3, %v178_v18 }
  0xf9   : > { %1323 = vmatmul.mubr.msk.bf16.vlgmr.msra.gmra.mrb[0].mxu0 %vm207_vm3, %v178_v18  ;;  %vm1154_vm3 = vcmask 932864  }
 0x1c9   : > { %v1121_v19 = vpop.f32.mrb[0].mxu1 }
 0x1ca   : > { %1178 = vrot.lane.b32.xlu1 %v1121_v19, %s1610_s24  ;;  %v1401_v20 = vpop.f32.mrb[1].mxu1 }
 0x1cb   : > { %v1124_v21 = vpop.f32.mrb[2].mxu1 }
 0x1cc   : > { %v1080_v3 = vpop.f32.mrb[0].mxu0  ;;  %v1402_v22 = vpop.f32.mrb[3].mxu1 }
 0x1cd   : > { %1131 = vrot.lane.b32.xlu0 %v1080_v3, %s1603_s30  ;;  %v1082_v23 = vpop.f32.mrb[1].mxu0  ;;  %s1618_s30 = smov 104  }
 0x1ce   : > { %v1084_v6 = vpop.f32.mrb[2].mxu0  ;;  %1150 = vrot.lane.b32.xlu1 %v1080_v3, %s1611_s25 }
 0x1cf   : > { %v1085_v24 = vpop.f32.mrb[3].mxu0 }
 0x1d1   : > { %1134 = vrot.lane.b32.xlu0 %v1080_v3, %s1612_s26 }
 0x1d2   : > { %1157 = vrot.lane.b32.xlu1 %v1082_v23, %s1613_s27 }
 0x1d5   : > { %1137 = vrot.lane.b32.xlu0 %v1080_v3, %s1614_s28  ;;  %s1538_s28 = sshll.u32 %s1622_s16, 4  ;;  %s1539_s28 = int_to_ptr.vmem [resolvable:$false] %s1538_s28 }
 0x1d6   : > { %1163 = vrot.lane.b32.xlu1 %v1082_v23, %s1606_s6 }
 0x1d9   : > { %1140 = vrot.lane.b32.xlu0 %v1080_v3, %s1615_s29  ;;  %s1540_s29 = scalar_lea.vmem %s1539_s28, 512 }
 0x1da   : > { %1166 = vrot.lane.b32.xlu1 %v1082_v23, %s1616_s5 }
 0x1dd   : > { %1143 = vrot.lane.b32.xlu0 %v1080_v3, %s1617_s7 }
 0x1de   : > { %1169 = vrot.lane.b32.xlu1 %v1082_v23, %s1618_s30 }
 0x1e1   : > { %1146 = vrot.lane.b32.xlu0 %v1080_v3, %s1619_s8 }
 0x1e2   : > { %1172 = vrot.lane.b32.xlu1 %v1082_v23, %s1620_s9 }
 0x1e5   : > { %1160 = vrot.lane.b32.xlu0 %v1082_v23, %s1604_s4  ;;  %s161_s4 = sand.u32 1, %s1588_s13  }
 0x1e6   : > { %1183 = vrot.lane.b32.xlu1 %v1121_v19, %s1621_s10  ;;  %s1296_s6 = sshll.u32 %s161_s4, 4  ;;  %s1219_s26 = scalar_lea.sflag [#allocation3], %s161_s4 }
 0x1e7   : > { %s163_s17 = scalar_lea.vmem [#allocation2], %s1296_s6 }
 0x1e8   : > { %s1233_s19 = sshll.u32 %s163_s17, 4  ;;  %s1836_s19 = int_to_ptr.vmem [resolvable:$true] %s1233_s19 }
 0x1e9   : > { %1176 = vrot.lane.b32.xlu0 %v1082_v23, %s1610_s24  ;;  %s1534_s27 = scalar_lea.vmem %s1836_s19, 256  ;;  %p1541_p0 = scmp.lt.s32.totalorder %s1836_s19, %s1539_s28 }
 0x1ea   : > { %p1535_p11 = scmp.ne.s32.totalorder %s1836_s19, %s1534_s27  ;;  %p1542_p1 = scmp.lt.s32.totalorder %s1540_s29, %s1534_s27 }
 0x1ec   : > { %p1536_p12 = pnand %p1535_p11, %p1681_p5  ;;  %p1543_p2 = por %p1542_p1, %p1541_p0 }
 0x1ed   : > { %1152 = vrot.lane.b32.xlu0 %v1082_v23, %s1611_s25  ;;  %s1834_s25 = scalar_lea.hbm %s1881_s3, %s1330_s11 }
 0x1ee   : > { %p1537_p13 = pneg %p1536_p12 }
 0x1f0   : > { %p1544_p3 = pnand %p1543_p2, %p1537_p13 }
 0x23c   : > { %v1179_v26 = vpop.permute.xlu1 %1178 }
 0x23f   : > { %v1132_v27 = vpop.permute.xlu0 %1131 }
 0x240   : > { %v1151_v28 = vpop.permute.xlu1 %1150  ;;  %v1187_v43 = vsel %vm1186_vm11, %v1080_v3, %v1132_v27 }
 0x243   : > { %v1135_v29 = vpop.permute.xlu0 %1134 }
 0x244   : > { %v1158_v30 = vpop.permute.xlu1 %1157  ;;  %v1189_v46 = vsel %vm1188_vm12, %v1187_v43, %v1135_v29 }
 0x247   : > { %v1138_v31 = vpop.permute.xlu0 %1137 }
 0x248   : > { %v1164_v32 = vpop.permute.xlu1 %1163  ;;  %v1191_v49 = vsel %vm1190_vm13, %v1189_v46, %v1138_v31 }
 0x24b   : > { %v1141_v33 = vpop.permute.xlu0 %1140 }
 0x24c   : > { %v1167_v34 = vpop.permute.xlu1 %1166  ;;  %v1193_v52 = vsel %vm1192_vm15, %v1191_v49, %v1141_v33 }
 0x24f   : > { %v1144_v35 = vpop.permute.xlu0 %1143 }
 0x250   : > { %v1170_v36 = vpop.permute.xlu1 %1169  ;;  %v1195_v54 = vsel %vm1194_vm0, %v1193_v52, %v1144_v35 }
 0x253   : > { %v1147_v37 = vpop.permute.xlu0 %1146 }
 0x254   : > { %v1173_v38 = vpop.permute.xlu1 %1172  ;;  %v1197_v57 = vsel %vm1196_vm2, %v1195_v54, %v1147_v37 }
 0x257   : > { %v1161_v39 = vpop.permute.xlu0 %1160 }
 0x258   : > { %v1200_v40 = vsel %vm1186_vm11, %v1158_v30, %v1161_v39  ;;  %v1184_v50 = vpop.permute.xlu1 %1183 }
 0x259   : > { %v1201_v41 = vsel %vm1188_vm12, %v1200_v40, %v1164_v32 }
 0x25a   : > { %v1202_v42 = vsel %vm1190_vm13, %v1201_v41, %v1167_v34 }
 0x25b   : > { %v1177_v44 = vpop.permute.xlu0 %1176  ;;  %v1203_v45 = vsel %vm1192_vm15, %v1202_v42, %v1170_v36 }
 0x25c   : > { %v1181_v47 = vsel %vm1180_vm14, %v1177_v44, %v1179_v26  ;;  %v1204_v48 = vsel %vm1194_vm0, %v1203_v45, %v1173_v38 }
 0x25d   : > { %v1205_v51 = vsel %vm1196_vm2, %v1204_v48, %v1181_v47 }
 0x25e   : > { %v1206_v53 = vsel %vm1198_vm1, %v1205_v51, %v1184_v50 }
 0x25f   : > { %v1213_v55 = vadd.f32 %v1210_v25, %v1206_v53  ;;  %v1153_v56 = vpop.permute.xlu0 %1152 }
 0x260   : > { %v1155_v58 = vsel %vm1154_vm3, %v1151_v28, %v1153_v56 }
 0x261   : > { %v1199_v59 = vsel %vm1198_vm1, %v1197_v57, %v1155_v58  ;;  %v1215_v60 = vmax.f32 %v1213_v55, 0.0 }
 0x262   : > { %v1212_v61 = vadd.f32 %v1210_v25, %v1199_v59 }
 0x263   : > { %1217 = vst [vmem:[%s163_s17 + $0x8] sm:$0xff] %v1215_v60 }
 0x264   : > { %v1214_v62 = vmax.f32 %v1212_v61, 0.0 }
 0x266   : > { %1216 = vst [vmem:[%s163_s17] sm:$0xff] %v1214_v62 }
 0x267   : > { %1547 = shalt.err (!%p1544_p3)
}
 0x268   : > { %s1548_s5 = scalar_lea.hbm %s1834_s25, 256  ;;  %s1552_s8 = scalar_lea.hbm %s1881_s3, 512 }
 0x269   : > { %p1549_p4 = scmp.ne.s32.totalorder %s1834_s25, %s1548_s5  ;;  %p1553_p9 = scmp.lt.u32.totalorder %s1834_s25, %s1881_s3 }
 0x26a   : > { %p1554_p10 = scmp.lt.u32.totalorder %s1552_s8, %s1548_s5  ;;  %p1556_p12 = scmp.lt.u32.totalorder %s1548_s5, %s1834_s25 }
 0x26b   : > { %p1550_p7 = pnand %p1549_p4, %p1681_p5 }
 0x26c   : > { %p1555_p11 = por %p1554_p10, %p1553_p9 }
 0x26d   : > { %p1551_p8 = pneg %p1550_p7 }
 0x26e   : > { %p1557_p13 = por %p1556_p12, %p1555_p11 }
 0x270   : > { %p1558_p0 = pnand %p1557_p13, %p1551_p8 }
 0x272   : > { %1561 = shalt.err (!%p1558_p0)
}
 0x273   : > { %1468 = dma.vmem_to_hbm [thread:$0]  (%p1681_p5), %s1836_s19, 256, %s1834_s25, %s1219_s26  }
 0x274 PF: > { %p1474_p1 = scmp.ge.s32.totalorder %s1596_s15, 2  ;;  %s1245_s4 = sand.u32 1, %s1584_s12  }
 0x275   : > { %s1246_s6 = scalar_lea.sflag [#allocation3], %s1245_s4 }
 0x276   : > { %p1471_p2 = pnand %p1474_p1, %p1685_p6 }
 0x278   : > { %1579 = dma.done.wait (!%p1471_p2), %s1246_s6, 256  }
 0x279   : > { %1581 = vsyncadd (!%p1471_p2), %s1246_s6, 4294967040  ;;  %p13_p3 = scmp.ge.s32.totalorder %s1668_s18, 4   ;;  %s1884_s12 = smov %s1588_s13 }
 0x27a   : > { %s1885_s13 = smov %s1592_s14  ;;  %s1886_s14 = smov %s1679_s21 }
 0x27b   : > { %s1887_s15 = smov %s1668_s18  ;;  %15 = sbr.rel (!%p13_p3) target bundleno = 3 (0x3), region = 67 }
 0x282   :  { %1251 = vsyncpa [#allocation3], 1 }
 0x283   :  { %1253 = vsyncpa [#allocation3 + $0x1], 1 }

</bundles_post_ra>
